<compile_context>
chip_gen: v7x
topology: tpu7x:2x2x1
jax: 0.10.0
libtpu: 0.0.40
codegen_flags: <defaults>
</compile_context>

<pallas_src>
import jax
import jax.numpy as jnp
from jax.experimental import pallas as pl
from jax.experimental.pallas import tpu as pltpu


def self_attn_kernel(gamma_ref, x_ref, xt_ref, wf_ref, o_ref):
    g = gamma_ref[0]                       # scalar gamma, hoisted once (SMEM path)
    wf = wf_ref[...]                       # (2C, C) fused weights, matmul dtype
    dt = wf.dtype
    C = wf.shape[1]
    n_b = x_ref.shape[0]                   # static batch block (1 on v7x, B on v5e/v6e)

    def body(b, carry):
        x = x_ref[b]                       # (C, N) f32  (kept f32 for the residual)
        xt = xt_ref[b]                     # (N, C) matmul dtype
        # Fused 1x1 convs: rows [0:C] -> (Wq^T Wk) @ x, rows [C:2C] -> Wv @ x.
        proj = jnp.dot(wf, x.astype(dt), preferred_element_type=jnp.float32)  # (2C, N)
        kq = proj[:C]                      # (C, N) f32
        v = proj[C:]                       # (C, N) f32
        # attn[i, j] = sum_c x[c, i] * kq[c, j]  == sigmoid(q^T k) of the original.
        attn = jax.nn.sigmoid(
            jnp.dot(xt, kq.astype(dt), preferred_element_type=jnp.float32))   # (N, N)
        # out[c, i] = sum_j v[c, j] * attn[i, j]  -- contract last axes, no attn.T.
        out = jax.lax.dot_general(
            v.astype(dt), attn.astype(dt),
            dimension_numbers=(((1,), (1,)), ((), ())),
            preferred_element_type=jnp.float32)                               # (C, N)
        o_ref[b] = g * out + x
        return carry

    jax.lax.fori_loop(0, n_b, body, 0, unroll=True)


def _default_block_b(B):
    """Batch block size: fold the batch on single-TC chips, shard it on v7x."""
    try:
        kind = jax.devices()[0].device_kind.lower()
    except Exception:
        kind = ""
    single_tc = any(t in kind for t in ("v5 lite", "v5e", "v5litepod", "v6 lite", "v6e"))
    return B if single_tc else 1


def self_attn_forward(x_nchw, wq, wk, wv, gamma, *, use_bf16=True, block_b=None):
    """x_nchw: (B, C, H, W) float32. Returns (B, C, H, W) float32."""
    B, C, H, W = x_nchw.shape
    N = H * W
    x_flat = x_nchw.reshape(B, C, N).astype(jnp.float32)

    mm_dtype = jnp.bfloat16 if use_bf16 else jnp.float32
    # Algebraic fold (exact: 1x1 convs, no bias): Wqk = Wq^T @ Wk, fused with Wv.
    wqk = jnp.dot(wq.T, wk)                                  # (C, C)
    wf = jnp.concatenate([wqk, wv], axis=0).astype(mm_dtype)  # (2C, C)
    # x^T in the matmul dtype so the attention-score matmul is a plain NN matmul.
    x_t = x_flat.transpose(0, 2, 1).astype(mm_dtype)          # (B, N, C)

    if block_b is None:
        block_b = _default_block_b(B)
    assert B % block_b == 0
    grid_b = B // block_b

    out_flat = pl.pallas_call(
        self_attn_kernel,
        out_shape=jax.ShapeDtypeStruct((B, C, N), jnp.float32),
        grid_spec=pltpu.PrefetchScalarGridSpec(
            num_scalar_prefetch=0,
            grid=(grid_b,),
            in_specs=[
                pl.BlockSpec(memory_space=pltpu.MemorySpace.SMEM),       # gamma (1,)
                pl.BlockSpec((block_b, C, N), lambda b: (b, 0, 0)),      # x   (f32)
                pl.BlockSpec((block_b, N, C), lambda b: (b, 0, 0)),      # x^T (mm dtype)
                pl.BlockSpec((2 * C, C), lambda b: (0, 0)),              # fused weights
            ],
            out_specs=pl.BlockSpec((block_b, C, N), lambda b: (b, 0, 0)),
        ),
        compiler_params=pltpu.CompilerParams(
            dimension_semantics=("parallel",)),
    )(gamma, x_flat, x_t, wf)

    return out_flat.reshape(B, C, H, W)


def self_attn_reference(x_nchw, wq, wk, wv, gamma):
    """Pure-JAX f32 reference mirroring the PyTorch forward."""
    B, C, H, W = x_nchw.shape
    N = H * W
    xf = x_nchw.reshape(B, C, N)
    q = jnp.einsum('oc,bcn->bon', wq, xf)                      # (B, C8, N)
    k = jnp.einsum('oc,bcn->bon', wk, xf)                      # (B, C8, N)
    v = jnp.einsum('oc,bcn->bon', wv, xf)                      # (B, C,  N)
    attn = jax.nn.sigmoid(jnp.einsum('bci,bcj->bij', q, k))    # (B, N, N)
    out = jnp.einsum('bcj,bij->bci', v, attn)                  # (B, C, N)
    return (gamma[0] * out + xf).reshape(B, C, H, W)


if __name__ == "__main__":
    B, C, H, W = 2, 16, 16, 16
    C8 = C // 8

    key = jax.random.PRNGKey(0)
    kx, kq, kk, kv = jax.random.split(key, 4)

    x = jax.random.normal(kx, (B, C, H, W), dtype=jnp.float32)
    # 1x1 convs, bias=False -> plain (Cout, Cin) matrices.
    wq = jax.random.normal(kq, (C8, C), dtype=jnp.float32) * 0.1
    wk = jax.random.normal(kk, (C8, C), dtype=jnp.float32) * 0.1
    wv = jax.random.normal(kv, (C, C), dtype=jnp.float32) * 0.1
    gamma = jnp.full((1,), 0.5, dtype=jnp.float32)

    ref = self_attn_reference(x, wq, wk, wv, gamma)

    # f32 matmul path, both batch-blocking strategies (exact up to f32 rounding).
    out_f32_a = jax.block_until_ready(
        self_attn_forward(x, wq, wk, wv, gamma, use_bf16=False, block_b=1))
    out_f32_b = jax.block_until_ready(
        self_attn_forward(x, wq, wk, wv, gamma, use_bf16=False, block_b=B))
    assert jnp.allclose(out_f32_a, ref, atol=1e-3, rtol=1e-3)
    assert jnp.allclose(out_f32_b, ref, atol=1e-3, rtol=1e-3)

    # Default (chip-aware) path with bf16 matmul operands / f32 accumulation:
    # looser tolerance accounts for the bf16 operand rounding (~0.5-1% relative).
    out_bf16 = jax.block_until_ready(self_attn_forward(x, wq, wk, wv, gamma))
    assert jnp.allclose(out_bf16, ref, atol=2e-1, rtol=5e-2)

    # gamma = 0 (the PyTorch module's init): output must reduce to the residual x.
    gamma0 = jnp.zeros((1,), dtype=jnp.float32)
    out_g0 = jax.block_until_ready(self_attn_forward(x, wq, wk, wv, gamma0))
    ref_g0 = self_attn_reference(x, wq, wk, wv, gamma0)
    assert jnp.allclose(out_g0, ref_g0, atol=1e-5, rtol=1e-5)

    print("KERNEL_OK")
</pallas_src>

<mosaic_0001>
module attributes {stable_mosaic.version = 11 : i64} {
  func.func @self_attn_kernel(%arg0: i32, %arg1: memref<1xf32, #tpu.memory_space<smem>>, %arg2: memref<1x16x256xf32, #tpu.memory_space<vmem>>, %arg3: memref<1x256x16xf32, #tpu.memory_space<vmem>>, %arg4: memref<32x16xf32, #tpu.memory_space<vmem>>, %arg5: memref<1x16x256xf32, #tpu.memory_space<vmem>>) attributes {dimension_semantics = [#tpu.dimension_semantics<parallel>], iteration_bounds = array<i64: 2>, scalar_prefetch = 0 : i64, scratch_operands = 0 : i64, tpu.core_type = #tpu.core_type<tc>, window_params = [{transform_indices = @transform_0, window_bounds = array<i64: 1>}, {transform_indices = @transform_1, window_bounds = array<i64: 1, 16, 256>}, {transform_indices = @transform_2, window_bounds = array<i64: 1, 256, 16>}, {pipeline_mode = #tpu.pipeline_mode<synchronous>, transform_indices = @transform_3, window_bounds = array<i64: 32, 16>}, {transform_indices = @transform_4, window_bounds = array<i64: 1, 16, 256>}]} {
    %c0 = arith.constant 0 : index
    %0 = memref.load %arg1[%c0] : memref<1xf32, #tpu.memory_space<smem>>
    %c0_0 = arith.constant 0 : index
    %c0_1 = arith.constant 0 : index
    %1 = vector.load %arg4[%c0_0, %c0_1] : memref<32x16xf32, #tpu.memory_space<vmem>>, vector<32x16xf32>
    %c0_i32 = arith.constant 0 : i32
    %2 = arith.index_cast %c0_i32 : i32 to index
    %c0_2 = arith.constant 0 : index
    %c0_3 = arith.constant 0 : index
    %3 = vector.load %arg2[%2, %c0_2, %c0_3] : memref<1x16x256xf32, #tpu.memory_space<vmem>>, vector<1x16x256xf32>
    %4 = vector.shape_cast %3 : vector<1x16x256xf32> to vector<16x256xf32>
    %5 = arith.index_cast %c0_i32 : i32 to index
    %c0_4 = arith.constant 0 : index
    %c0_5 = arith.constant 0 : index
    %6 = vector.load %arg3[%5, %c0_4, %c0_5] : memref<1x256x16xf32, #tpu.memory_space<vmem>>, vector<1x256x16xf32>
    %7 = vector.shape_cast %6 : vector<1x256x16xf32> to vector<256x16xf32>
    %cst = arith.constant dense<0.000000e+00> : vector<32x256xf32>
    %8 = tpu.matmul %1, %4, %cst {dimension_numbers = #tpu.dot_dimension_numbers<[1], [0], [0], [1], [0, 0, 1, 1], [], []>} : vector<32x16xf32>, vector<16x256xf32>, vector<32x256xf32> -> vector<32x256xf32>
    %9 = vector.extract_strided_slice %8 {offsets = [0, 0], sizes = [16, 256], strides = [1, 1]} : vector<32x256xf32> to vector<16x256xf32>
    %10 = vector.extract_strided_slice %8 {offsets = [16, 0], sizes = [16, 256], strides = [1, 1]} : vector<32x256xf32> to vector<16x256xf32>
    %cst_6 = arith.constant dense<0.000000e+00> : vector<256x256xf32>
    %11 = tpu.matmul %7, %9, %cst_6 {dimension_numbers = #tpu.dot_dimension_numbers<[1], [0], [0], [1], [0, 0, 1, 1], [], []>} : vector<256x16xf32>, vector<16x256xf32>, vector<256x256xf32> -> vector<256x256xf32>
    %12 = arith.negf %11 : vector<256x256xf32>
    %13 = math.exp %12 : vector<256x256xf32>
    %cst_7 = arith.constant 1.000000e+00 : f32
    %14 = vector.broadcast %cst_7 : f32 to vector<256x256xf32>
    %15 = arith.addf %14, %13 : vector<256x256xf32>
    %16 = arith.divf %14, %15 : vector<256x256xf32>
    %cst_8 = arith.constant dense<0.000000e+00> : vector<16x256xf32>
    %17 = tpu.matmul %10, %16, %cst_8 {dimension_numbers = #tpu.dot_dimension_numbers<[1], [1], [0], [0], [0, 0, 1, 0], [], []>} : vector<16x256xf32>, vector<256x256xf32>, vector<16x256xf32> -> vector<16x256xf32>
    %18 = vector.broadcast %0 : f32 to vector<16x256xf32>
    %19 = arith.mulf %18, %17 : vector<16x256xf32>
    %20 = arith.addf %19, %4 : vector<16x256xf32>
    %21 = arith.index_cast %c0_i32 : i32 to index
    %c0_9 = arith.constant 0 : index
    %c0_10 = arith.constant 0 : index
    %22 = vector.load %arg5[%21, %c0_9, %c0_10] : memref<1x16x256xf32, #tpu.memory_space<vmem>>, vector<1x16x256xf32>
    %23 = vector.shape_cast %22 : vector<1x16x256xf32> to vector<16x256xf32>
    %24 = vector.shape_cast %20 : vector<16x256xf32> to vector<1x16x256xf32>
    tpu.vector_store %arg5[%21, %c0_9, %c0_10], %24 {strides = array<i32>} : memref<1x16x256xf32, #tpu.memory_space<vmem>>, vector<1x16x256xf32>,
    %c1_i32 = arith.constant 1 : i32
    return
  }
  func.func @transform_0(%arg0: i32) -> i32 {
    %c0_i32 = arith.constant 0 : i32
    %c0_i32_0 = arith.constant 0 : i32
    return %c0_i32 : i32
  }
  func.func @transform_1(%arg0: i32) -> (i32, i32, i32) {
    %c0_i32 = arith.constant 0 : i32
    %c0_i32_0 = arith.constant 0 : i32
    %c0_i32_1 = arith.constant 0 : i32
    return %arg0, %c0_i32, %c0_i32_0 : i32, i32, i32
  }
  func.func @transform_2(%arg0: i32) -> (i32, i32, i32) {
    %c0_i32 = arith.constant 0 : i32
    %c0_i32_0 = arith.constant 0 : i32
    %c0_i32_1 = arith.constant 0 : i32
    return %arg0, %c0_i32, %c0_i32_0 : i32, i32, i32
  }
  func.func @transform_3(%arg0: i32) -> (i32, i32) {
    %c0_i32 = arith.constant 0 : i32
    %c0_i32_0 = arith.constant 0 : i32
    %c0_i32_1 = arith.constant 0 : i32
    return %c0_i32, %c0_i32_0 : i32, i32
  }
  func.func @transform_4(%arg0: i32) -> (i32, i32, i32) {
    %c0_i32 = arith.constant 0 : i32
    %c0_i32_0 = arith.constant 0 : i32
    %c0_i32_1 = arith.constant 0 : i32
    return %arg0, %c0_i32, %c0_i32_0 : i32, i32, i32
  }
}

</mosaic_0001>

<bundles_post_ra>
// kernel: tpu_custom_call.1
= control target key start
LH: loop header
LB: loop body
LE: loop exit
PB: predicated region body
PF: predicated region fallthrough
CT: control target
= control target key end

     0   :  { %s2134_s0 = inlined_call_operand.<no memory space> [shape: f32[1], index: 0, kind: input, shape index: {}]   ;;  %s2135_s1 = inlined_call_operand.vmem [shape: f32[2,16,256], index: 1, kind: input, shape index: {}]   ;;  %s2136_s2 = inlined_call_operand.vmem [shape: f32[2,256,16], index: 2, kind: input, shape index: {}]   ;;  %s2137_s3 = inlined_call_operand.vmem [shape: f32[32,16], index: 3, kind: input, shape index: {}]   ;;  %s2138_s4 = inlined_call_operand.hbm [shape: f32[2,16,256], index: 4, kind: output, shape index: {}]  }
   0x1   :  { %9 = sst [smem:[#allocation2]] %s2134_s0 }
   0x2   :  { %10 = vsyncpa [#allocation4], 0 }
   0x3   :  { %12 = vsyncpa [#allocation4 + $0x1], 0  ;;  %s1894_s17 = smov 0   ;;  %s1896_s18 = smov 0  }
   0x4   :  { %s1898_s19 = smov 0   ;;  %s1900_s20 = smov 0  }
   0x5 LB: > { %s1915_s0 = sadd.s32 4294967295, %s1860_s20   ;;  %s1275_s21 = sadd.s32 4294967294, %s1860_s20   ;;  %s1860_s20 = sphi %s1900_s20, %s2144_s20   ;;  %s1856_s19 = sphi %s1898_s19, %s2143_s19   ;;  %s1852_s18 = sphi %s1896_s18, %s2142_s18   ;;  %s1848_s17 = sphi %s1894_s17, %s2141_s17  }
   0x6   : > { %s1919_s22 = sadd.s32 1, %s1860_s20   ;;  %s119_s23 = sadd.s32 1, %s1856_s19 }
   0x7   : > { %s116_s24 = ssub.s32 %s1860_s20, %s1919_s22  ;;  %p129_p0 = scmp.ne.s32.totalorder %s1856_s19, %s1852_s18 }
   0x8   : > { %p117_p1 = scmp.eq.s32.totalorder %s116_s24, 0  ;;  %p130_p2 = scmp.eq.s32.totalorder %s1915_s0, 1 }
   0x9   : > { %p135_p3 = scmp.ne.s32.totalorder %s1852_s18, %s1848_s17  ;;  %p136_p4 = scmp.eq.s32.totalorder %s1275_s21, 1 }
   0xa   : > { %s1930_s25 = scalar_select %p117_p1, %s1856_s19, %s119_s23  }
   0xb   : > { %p1932_p5 = por %p130_p2, %p129_p0  ;;  %p1936_p6 = por %p136_p4, %p135_p3 }
   0xc   : > { %p1278_p7 = scmp.ge.s32.totalorder %s1860_s20, 1  ;;  %p176_p8 = scmp.lt.s32.totalorder %s1860_s20, 3 }
   0xe   : > { %p177_p9 = pnand %p1278_p7, %p176_p8 }
   0xf   : > { %p207_p10 = scmp.lt.s32.totalorder (!%p177_p9), %s1915_s0, 1  ;;  %v1862_v0 = vmov (!%p177_p9), 0.0   ;;  %v218_v7 = vld [vmem:[%s2137_s3] sm:$0xff] (!%p177_p9)  ;;  %vm258_vm0 = vcmask (!%p177_p9), 130048   ;;  %v219_v8 = vld [vmem:[%s2137_s3 + $0x8] sm:$0xff] (!%p177_p9)  ;;  %v220_v15 = vld [vmem:[%s2137_s3 + $0x10] sm:$0xff] (!%p177_p9) }
  0x10   : > { %180 = sbr.rel (%p177_p9) target bundleno = 865 (0x361), region = 36  ;;  %335 = vmatprep.mubr.f32.mxu0 (!%p177_p9), %v1862_v0  ;;  %520 = vmatprep.mubr.f32.mxu1 (!%p177_p9), %v1862_v0  ;;  %v221_v17 = vld [vmem:[%s2137_s3 + $0x18] sm:$0xff] (!%p177_p9)  ;;  %s217_s24 = sld [smem:[#allocation2]] (!%p177_p9) }
  0x11   : > { %s1391_s7 = sshll.u32 (!%p177_p9), %s1915_s0, 9  ;;  %s1863_s12 = smov (!%p177_p9), [#allocation3]  }
  0x12   : > { %s2089_s10 = scalar_lea.hbm (!%p177_p9), %s2138_s4, %s1391_s7  ;;  %s1802_s13 = sshll.u32 (!%p177_p9), %s1863_s12, 4  ;;  %s1803_s13 = int_to_ptr.vmem [resolvable:$false] %s1802_s13 }
  0x17   : > { %s208_s28 = scalar_select %p207_p10, %s1915_s0, 1 }
  0x19   : > { %s1389_s29 = sshll.u32 %s208_s28, 5  ;;  %s1390_s11 = sshll.u32 %s208_s28, 8 }
  0x1a   : > { %s1949_s6 = scalar_lea.vmem %s2135_s1, %s1389_s29  ;;  %s1968_s14 = scalar_lea.vmem %s2136_s2, %s1390_s11 }
  0x1b   : > { %v223_v1 = vld [vmem:[%s1949_s6 + $0x8] sm:$0xff]  ;;  %v225_v2 = vld [vmem:[%s1949_s6 + $0x18] sm:$0xff]  ;;  %v222_v3 = vld [vmem:[%s1949_s6] sm:$0xff]  ;;  %s204_s28 = sand.u32 1, %s1852_s18  }
  0x1c   : > { %v1392_v4 = vpack.c.bf16 %v225_v2, %v223_v1  ;;  %v224_v5 = vld [vmem:[%s1949_s6 + $0x10] sm:$0xff]  ;;  %v226_v16 = vld [vmem:[%s1968_s14] sm:$0xff]  ;;  %v227_v18 = vld [vmem:[%s1968_s14 + $0x8] sm:$0xff]  ;;  %s1279_s29 = sshll.u32 %s204_s28, 5  ;;  %s2093_s0 = scalar_lea.sflag [#allocation4], %s204_s28 }
  0x1d   : > { %v1394_v6 = vpack.c.bf16 %v224_v5, %v222_v3  ;;  %v228_v19 = vld [vmem:[%s1968_s14 + $0x10] sm:$0xff]  ;;  %v229_v20 = vld [vmem:[%s1968_s14 + $0x18] sm:$0xff]  ;;  %v230_v21 = vld [vmem:[%s1968_s14 + $0x20] sm:$0xff]  ;;  %s206_s30 = scalar_lea.vmem [#allocation3], %s1279_s29 }
  0x1e   : > { %1393 = vmatprep.subr.bf16.mxu0 %v1392_v4  ;;  %v231_v22 = vld [vmem:[%s1968_s14 + $0x28] sm:$0xff]  ;;  %v232_v23 = vld [vmem:[%s1968_s14 + $0x30] sm:$0xff]  ;;  %v233_v24 = vld [vmem:[%s1968_s14 + $0x38] sm:$0xff]  ;;  %s1201_s5 = sshll.u32 %s206_s30, 4  ;;  %s2083_s5 = int_to_ptr.vmem [resolvable:$true] %s1201_s5 }
  0x1f   : > { %1395 = vmatpush1.bf16.msra.mxu0 %v1394_v6  ;;  %v234_v25 = vld [vmem:[%s1968_s14 + $0x40] sm:$0xff]  ;;  %v235_v26 = vld [vmem:[%s1968_s14 + $0x48] sm:$0xff]  ;;  %v236_v27 = vld [vmem:[%s1968_s14 + $0x50] sm:$0xff]  ;;  %s1798_s11 = scalar_lea.vmem %s2083_s5, 512  ;;  %p1805_p0 = scmp.lt.s32.totalorder %s2083_s5, %s1803_s13 }
  0x20   : > { %v237_v28 = vld [vmem:[%s1968_s14 + $0x58] sm:$0xff]  ;;  %v238_v29 = vld [vmem:[%s1968_s14 + $0x60] sm:$0xff]  ;;  %v239_v30 = vld [vmem:[%s1968_s14 + $0x68] sm:$0xff]  ;;  %p1799_p11 = scmp.ne.s32.totalorder %s2083_s5, %s1798_s11 }
  0x21   : > { %v240_v31 = vld [vmem:[%s1968_s14 + $0x70] sm:$0xff]  ;;  %v241_v32 = vld [vmem:[%s1968_s14 + $0x78] sm:$0xff]  ;;  %v242_v33 = vld [vmem:[%s1968_s14 + $0x80] sm:$0xff] }
  0x22   : > { %1284 = vmatmul.mubr.msk.f32.vlgmr.msra.gmra.mrb[0].mxu0 %vm258_vm0, %v218_v7  ;;  %v243_v34 = vld [vmem:[%s1968_s14 + $0x88] sm:$0xff]  ;;  %v244_v35 = vld [vmem:[%s1968_s14 + $0x90] sm:$0xff]  ;;  %v245_v36 = vld [vmem:[%s1968_s14 + $0x98] sm:$0xff]  ;;  %p1800_p12 = pnand %p1799_p11, %p1932_p5 }
  0x23   : > { %341 = vmatprep.mubr.f32.mxu0 %v1862_v0  ;;  %v246_v37 = vld [vmem:[%s1968_s14 + $0xa0] sm:$0xff]  ;;  %v247_v38 = vld [vmem:[%s1968_s14 + $0xa8] sm:$0xff]  ;;  %v248_v39 = vld [vmem:[%s1968_s14 + $0xb0] sm:$0xff] }
  0x24   : > { %v249_v40 = vld [vmem:[%s1968_s14 + $0xb8] sm:$0xff]  ;;  %v250_v41 = vld [vmem:[%s1968_s14 + $0xc0] sm:$0xff]  ;;  %v251_v42 = vld [vmem:[%s1968_s14 + $0xc8] sm:$0xff]  ;;  %p1801_p13 = pneg %p1800_p12 }
  0x25   : > { %v252_v43 = vld [vmem:[%s1968_s14 + $0xd0] sm:$0xff]  ;;  %v253_v44 = vld [vmem:[%s1968_s14 + $0xd8] sm:$0xff]  ;;  %v254_v45 = vld [vmem:[%s1968_s14 + $0xe0] sm:$0xff] }
  0x26   : > { %1285 = vmatmul.mubr.msk.f32.gmra.mrb[2].mxu0 %vm258_vm0, %v219_v8  ;;  %v255_v46 = vld [vmem:[%s1968_s14 + $0xe8] sm:$0xff]  ;;  %v256_v47 = vld [vmem:[%s1968_s14 + $0xf0] sm:$0xff]  ;;  %v257_v48 = vld [vmem:[%s1968_s14 + $0xf8] sm:$0xff]  ;;  %s1804_s14 = scalar_lea.vmem %s1803_s13, 1024 }
  0x27   : > { %347 = vmatprep.mubr.f32.mxu0 %v1862_v0  ;;  %p1806_p1 = scmp.lt.s32.totalorder %s1804_s14, %s1798_s11 }
  0x29   : > { %p1807_p2 = por %p1806_p1, %p1805_p0 }
  0x2a   : > { %1286 = vmatmul.mubr.msk.f32.gmra.mrb[4].mxu0 %vm258_vm0, %v220_v15 }
  0x2b   : > { %353 = vmatprep.mubr.f32.mxu0 %v1862_v0  ;;  %p1808_p3 = pnand %p1807_p2, %p1801_p13 }
  0x2e   : > { %1287 = vmatmul.mubr.msk.f32.gmra.mrb[6].mxu0 %vm258_vm0, %v221_v17 }
  0xf5   : > { %v337_v9 = vpop.f32.mrb[0].mxu0 }
  0xf6   : > { %v339_v10 = vpop.f32.mrb[1].mxu0 }
  0xf9   : > { %v343_v11 = vpop.f32.mrb[2].mxu0 }
  0xfa   : > { %v1398_v12 = vpack.c.bf16 %v343_v11, %v337_v9  ;;  %v345_v13 = vpop.f32.mrb[3].mxu0 }
  0xfb   : > { %v1396_v14 = vpack.c.bf16 %v345_v13, %v339_v10 }
  0xfd   : > { %1397 = vmatprep.subr.bf16.mxu1 %v1396_v14 }
  0xfe   : > { %1399 = vmatpush1.bf16.msra.mxu1 %v1398_v12 }
 0x101   : > { %1288 = vmatmul.mubr.msk.f32.vlgmr.msra.gmra.mrb[0].mxu1 %vm258_vm0, %v226_v16 }
 0x102   : > { %526 = vmatprep.mubr.f32.mxu1 %v1862_v0 }
 0x105   : > { %1289 = vmatmul.mubr.msk.f32.gmra.mrb[2].mxu1 %vm258_vm0, %v227_v18 }
 0x106   : > { %532 = vmatprep.mubr.f32.mxu1 %v1862_v0 }
 0x109   : > { %1290 = vmatmul.mubr.msk.f32.gmra.mrb[4].mxu1 %vm258_vm0, %v228_v19 }
 0x10a   : > { %538 = vmatprep.mubr.f32.mxu1 %v1862_v0 }
 0x10d   : > { %1291 = vmatmul.mubr.msk.f32.gmra.mrb[6].mxu1 %vm258_vm0, %v229_v20 }
 0x10e   : > { %544 = vmatprep.mubr.f32.mxu1 %v1862_v0 }
 0x111   : > { %1292 = vmatmul.mubr.msk.f32.gmra.mrb[8].mxu1 %vm258_vm0, %v230_v21 }
 0x112   : > { %550 = vmatprep.mubr.f32.mxu1 %v1862_v0 }
 0x115   : > { %1293 = vmatmul.mubr.msk.f32.gmra.mrb[10].mxu1 %vm258_vm0, %v231_v22 }
 0x116   : > { %556 = vmatprep.mubr.f32.mxu1 %v1862_v0 }
 0x119   : > { %1294 = vmatmul.mubr.msk.f32.gmra.mrb[12].mxu1 %vm258_vm0, %v232_v23 }
 0x11a   : > { %562 = vmatprep.mubr.f32.mxu1 %v1862_v0 }
 0x11d   : > { %1295 = vmatmul.mubr.msk.f32.gmra.mrb[14].mxu1 %vm258_vm0, %v233_v24 }
 0x11e   : > { %568 = vmatprep.mubr.f32.mxu1 %v1862_v0 }
 0x121   : > { %1296 = vmatmul.mubr.msk.f32.gmra.mrb[16].mxu1 %vm258_vm0, %v234_v25 }
 0x122   : > { %574 = vmatprep.mubr.f32.mxu1 %v1862_v0 }
 0x125   : > { %1297 = vmatmul.mubr.msk.f32.gmra.mrb[18].mxu1 %vm258_vm0, %v235_v26 }
 0x126   : > { %580 = vmatprep.mubr.f32.mxu1 %v1862_v0 }
 0x129   : > { %1298 = vmatmul.mubr.msk.f32.gmra.mrb[20].mxu1 %vm258_vm0, %v236_v27 }
 0x12a   : > { %586 = vmatprep.mubr.f32.mxu1 %v1862_v0 }
 0x12d   : > { %1299 = vmatmul.mubr.msk.f32.gmra.mrb[22].mxu1 %vm258_vm0, %v237_v28 }
 0x12e   : > { %592 = vmatprep.mubr.f32.mxu1 %v1862_v0 }
 0x131   : > { %1300 = vmatmul.mubr.msk.f32.gmra.mrb[24].mxu1 %vm258_vm0, %v238_v29 }
 0x132   : > { %598 = vmatprep.mubr.f32.mxu1 %v1862_v0 }
 0x135   : > { %1301 = vmatmul.mubr.msk.f32.gmra.mrb[26].mxu1 %vm258_vm0, %v239_v30 }
 0x136   : > { %604 = vmatprep.mubr.f32.mxu1 %v1862_v0 }
 0x139   : > { %1302 = vmatmul.mubr.msk.f32.gmra.mrb[28].mxu1 %vm258_vm0, %v240_v31  ;;  %v2074_v31 = vpop.f32.mrb[4].mxu0 }
 0x13a   : > { %610 = vmatprep.mubr.f32.mxu1 %v1862_v0 }
 0x13d   : > { %1303 = vmatmul.mubr.msk.f32.gmra.mrb[30].mxu1 %vm258_vm0, %v241_v32 }
 0x13e   : > { %616 = vmatprep.mubr.f32.mxu1 %v1862_v0 }
 0x141   : > { %1304 = vmatmul.mubr.msk.f32.gmra.mrb[32].mxu1 %vm258_vm0, %v242_v33 }
 0x142   : > { %622 = vmatprep.mubr.f32.mxu1 %v1862_v0 }
 0x145   : > { %1305 = vmatmul.mubr.msk.f32.gmra.mrb[34].mxu1 %vm258_vm0, %v243_v34 }
 0x146   : > { %628 = vmatprep.mubr.f32.mxu1 %v1862_v0 }
 0x149   : > { %1306 = vmatmul.mubr.msk.f32.gmra.mrb[36].mxu1 %vm258_vm0, %v244_v35 }
 0x14a   : > { %634 = vmatprep.mubr.f32.mxu1 %v1862_v0 }
 0x14d   : > { %1307 = vmatmul.mubr.msk.f32.gmra.mrb[38].mxu1 %vm258_vm0, %v245_v36 }
 0x14e   : > { %640 = vmatprep.mubr.f32.mxu1 %v1862_v0 }
 0x151   : > { %1308 = vmatmul.mubr.msk.f32.gmra.mrb[40].mxu1 %vm258_vm0, %v246_v37 }
 0x152   : > { %646 = vmatprep.mubr.f32.mxu1 %v1862_v0 }
 0x155   : > { %1309 = vmatmul.mubr.msk.f32.gmra.mrb[42].mxu1 %vm258_vm0, %v247_v38 }
 0x156   : > { %652 = vmatprep.mubr.f32.mxu1 %v1862_v0 }
 0x159   : > { %1310 = vmatmul.mubr.msk.f32.gmra.mrb[44].mxu1 %vm258_vm0, %v248_v39  ;;  %v351_v39 = vpop.f32.mrb[5].mxu0 }
 0x15a   : > { %658 = vmatprep.mubr.f32.mxu1 %v1862_v0  ;;  %1161 = vmatprep.mubr.f32.mxu0 %v351_v39 }
 0x15d   : > { %1311 = vmatmul.mubr.msk.f32.gmra.mrb[46].mxu1 %vm258_vm0, %v249_v40 }
 0x15e   : > { %664 = vmatprep.mubr.f32.mxu1 %v1862_v0 }
 0x161   : > { %1312 = vmatmul.mubr.msk.f32.gmra.mrb[48].mxu1 %vm258_vm0, %v250_v41 }
 0x162   : > { %670 = vmatprep.mubr.f32.mxu1 %v1862_v0 }
 0x165   : > { %1313 = vmatmul.mubr.msk.f32.gmra.mrb[50].mxu1 %vm258_vm0, %v251_v42  ;;  %v2076_v42 = vpop.f32.mrb[6].mxu0 }
 0x166   : > { %676 = vmatprep.mubr.f32.mxu1 %v1862_v0 }
 0x169   : > { %1314 = vmatmul.mubr.msk.f32.gmra.mrb[52].mxu1 %vm258_vm0, %v252_v43 }
 0x16a   : > { %682 = vmatprep.mubr.f32.mxu1 %v1862_v0 }
 0x16d   : > { %1315 = vmatmul.mubr.msk.f32.gmra.mrb[54].mxu1 %vm258_vm0, %v253_v44 }
 0x16e   : > { %688 = vmatprep.mubr.f32.mxu1 %v1862_v0 }
 0x171   : > { %1316 = vmatmul.mubr.msk.f32.gmra.mrb[56].mxu1 %vm258_vm0, %v254_v45 }
 0x172   : > { %694 = vmatprep.mubr.f32.mxu1 %v1862_v0 }
 0x175   : > { %1317 = vmatmul.mubr.msk.f32.gmra.mrb[58].mxu1 %vm258_vm0, %v255_v46  ;;  %v357_v46 = vpop.f32.mrb[7].mxu0 }
 0x176   : > { %700 = vmatprep.mubr.f32.mxu1 %v1862_v0 }
 0x179   : > { %1318 = vmatmul.mubr.msk.f32.gmra.mrb[60].mxu1 %vm258_vm0, %v256_v47 }
 0x17a   : > { %706 = vmatprep.mubr.f32.mxu1 %v1862_v0 }
 0x17d   : > { %1319 = vmatmul.mubr.msk.f32.gmra.mrb[62].mxu1 %vm258_vm0, %v257_v48 }
 0x17e   : > { %1167 = vmatprep.mubr.f32.mxu1 %v357_v46 }
 0x1d4   : > { %v522_v49 = vpop.f32.mrb[0].mxu1 }
 0x1d5   : > { %v1320_v50 = vmul.f32 -1.442695, %v522_v49  ;;  %v524_v51 = vpop.f32.mrb[1].mxu1 }
 0x1d6   : > { %v1321_v52 = vmul.f32 -1.442695, %v524_v51 }
 0x1d7   : > { %1538 = vpow2.f32 %v1320_v50 }
 0x1d8   : > { %1540 = vpow2.f32 %v1321_v52  ;;  %v528_v53 = vpop.f32.mrb[2].mxu1 }
 0x1d9   : > { %v1322_v54 = vmul.f32 -1.442695, %v528_v53  ;;  %v530_v55 = vpop.f32.mrb[3].mxu1 }
 0x1da   : > { %v1323_v56 = vmul.f32 -1.442695, %v530_v55 }
 0x1db   : > { %1542 = vpow2.f32 %v1322_v54 }
 0x1dc   : > { %1544 = vpow2.f32 %v1323_v56  ;;  %v534_v57 = vpop.f32.mrb[4].mxu1 }
 0x1dd   : > { %v1324_v58 = vmul.f32 -1.442695, %v534_v57  ;;  %v536_v59 = vpop.f32.mrb[5].mxu1 }
 0x1de   : > { %v1325_v60 = vmul.f32 -1.442695, %v536_v59 }
 0x1df   : > { %1546 = vpow2.f32 %v1324_v58 }
 0x1e0   : > { %v540_v61 = vpop.f32.mrb[6].mxu1  ;;  %1548 = vpow2.f32 %v1325_v60 }
 0x1e1   : > { %v1539_v62 = vpop.eup %1538  ;;  %v1326_v63 = vmul.f32 -1.442695, %v540_v61  ;;  %v542_v0 = vpop.f32.mrb[7].mxu1 }
 0x1e2   : > { %v1541_v1 = vpop.eup %1540  ;;  %v905_v2 = vadd.f32 1.0, %v1539_v62  ;;  %v1327_v3 = vmul.f32 -1.442695, %v542_v0 }
 0x1e3   : > { %v906_v4 = vadd.f32 1.0, %v1541_v1  ;;  %1550 = vpow2.f32 %v1326_v63 }
 0x1e4   : > { %1552 = vrcp.f32 %v905_v2  ;;  %v546_v5 = vpop.f32.mrb[8].mxu1 }
 0x1e5   : > { %v1543_v6 = vpop.eup %1542  ;;  %1554 = vrcp.f32 %v906_v4  ;;  %v1328_v7 = vmul.f32 -1.442695, %v546_v5  ;;  %v548_v8 = vpop.f32.mrb[9].mxu1 }
 0x1e6   : > { %v1545_v9 = vpop.eup %1544  ;;  %v907_v10 = vadd.f32 1.0, %v1543_v6  ;;  %1556 = vpow2.f32 %v1327_v3  ;;  %v1329_v11 = vmul.f32 -1.442695, %v548_v8 }
 0x1e7   : > { %v908_v12 = vadd.f32 1.0, %v1545_v9  ;;  %1558 = vpow2.f32 %v1328_v7 }
 0x1e8   : > { %1560 = vrcp.f32 %v907_v10  ;;  %v552_v13 = vpop.f32.mrb[10].mxu1 }
 0x1e9   : > { %v1547_v14 = vpop.eup %1546  ;;  %1562 = vrcp.f32 %v908_v12  ;;  %v1330_v15 = vmul.f32 -1.442695, %v552_v13  ;;  %v554_v16 = vpop.f32.mrb[11].mxu1 }
 0x1ea   : > { %v909_v17 = vadd.f32 1.0, %v1547_v14  ;;  %1564 = vpow2.f32 %v1329_v11  ;;  %v1331_v18 = vmul.f32 -1.442695, %v554_v16  ;;  %v1549_v19 = vpop.eup %1548 }
 0x1eb   : > { %1566 = vpow2.f32 %v1330_v15  ;;  %v910_v25 = vadd.f32 1.0, %v1549_v19 }
 0x1ec   : > { %v558_v20 = vpop.f32.mrb[12].mxu1  ;;  %1568 = vrcp.f32 %v909_v17 }
 0x1ed   : > { %v1551_v21 = vpop.eup %1550  ;;  %v1332_v22 = vmul.f32 -1.442695, %v558_v20  ;;  %v560_v23 = vpop.f32.mrb[13].mxu1  ;;  %1570 = vpow2.f32 %v1331_v18 }
 0x1ee   : > { %v1553_v24 = vpop.eup %1552  ;;  %v911_v26 = vadd.f32 1.0, %v1551_v21  ;;  %v1333_v27 = vmul.f32 -1.442695, %v560_v23 }
 0x1ef   : > { %v1555_v28 = vpop.eup %1554  ;;  %1572 = vpow2.f32 %v1332_v22 }
 0x1f0   : > { %v1557_v29 = vpop.eup %1556  ;;  %1574 = vrcp.f32 %v911_v26  ;;  %v564_v30 = vpop.f32.mrb[14].mxu1 }
 0x1f1   : > { %v1559_v32 = vpop.eup %1558  ;;  %v912_v33 = vadd.f32 1.0, %v1557_v29  ;;  %1576 = vpow2.f32 %v1333_v27  ;;  %v1334_v34 = vmul.f32 -1.442695, %v564_v30  ;;  %v566_v35 = vpop.f32.mrb[15].mxu1 }
 0x1f2   : > { %v1561_v36 = vpop.eup %1560  ;;  %1578 = vrcp.f32 %v910_v25  ;;  %v913_v37 = vadd.f32 1.0, %v1559_v32  ;;  %v1335_v38 = vmul.f32 -1.442695, %v566_v35 }
 0x1f3   : > { %v1563_v40 = vpop.eup %1562  ;;  %1580 = vrcp.f32 %v912_v33  ;;  %v1402_v41 = vpack.c.bf16 %v1561_v36, %v1553_v24 }
 0x1f4   : > { %v1565_v43 = vpop.eup %1564  ;;  %1582 = vrcp.f32 %v913_v37  ;;  %v570_v44 = vpop.f32.mrb[16].mxu1  ;;  %v1400_v45 = vpack.c.bf16 %v1563_v40, %v1555_v28 }
 0x1f5   : > { %v1567_v47 = vpop.eup %1566  ;;  %v914_v48 = vadd.f32 1.0, %v1565_v43  ;;  %1584 = vpow2.f32 %v1334_v34  ;;  %v1336_v49 = vmul.f32 -1.442695, %v570_v44  ;;  %v572_v50 = vpop.f32.mrb[17].mxu1 }
 0x1f6   : > { %v915_v51 = vadd.f32 1.0, %v1567_v47  ;;  %1586 = vpow2.f32 %v1335_v38  ;;  %v1337_v52 = vmul.f32 -1.442695, %v572_v50  ;;  %1401 = vmatprep.subr.bf16.mxu0 %v1400_v45  ;;  %1464 = vmatprep.subr.bf16.mxu1 %v1400_v45  ;;  %v1569_v53 = vpop.eup %1568 }
 0x1f7   : > { %1588 = vrcp.f32 %v914_v48  ;;  %1403 = vmatpush1.bf16.xpose.msra.mxu0 %v1402_v41  ;;  %1480 = vmatpush1.bf16.xpose.msra.mxu1 %v1402_v41  ;;  %v1571_v54 = vpop.eup %1570 }
 0x1f8   : > { %1590 = vrcp.f32 %v915_v51  ;;  %v576_v55 = vpop.f32.mrb[18].mxu1  ;;  %v916_v57 = vadd.f32 1.0, %v1571_v54 }
 0x1f9   : > { %v1573_v56 = vpop.eup %1572  ;;  %1592 = vpow2.f32 %v1336_v49  ;;  %v1338_v58 = vmul.f32 -1.442695, %v576_v55  ;;  %v578_v59 = vpop.f32.mrb[19].mxu1 }
 0x1fa   : > { %v1575_v60 = vpop.eup %1574  ;;  %v917_v61 = vadd.f32 1.0, %v1573_v56  ;;  %1594 = vpow2.f32 %v1337_v52  ;;  %v1339_v63 = vmul.f32 -1.442695, %v578_v59 }
 0x1fb   : > { %v1577_v62 = vpop.eup %1576  ;;  %1596 = vrcp.f32 %v916_v57  ;;  %v1406_v0 = vpack.c.bf16 %v1575_v60, %v1569_v53 }
 0x1fc   : > { %v1579_v1 = vpop.eup %1578  ;;  %1598 = vrcp.f32 %v917_v61  ;;  %v918_v2 = vadd.f32 1.0, %v1577_v62  ;;  %v582_v3 = vpop.f32.mrb[20].mxu1 }
 0x1fd   : > { %v1581_v4 = vpop.eup %1580  ;;  %1600 = vpow2.f32 %v1338_v58  ;;  %v1340_v5 = vmul.f32 -1.442695, %v582_v3  ;;  %v584_v6 = vpop.f32.mrb[21].mxu1 }
 0x1fe   : > { %v1583_v7 = vpop.eup %1582  ;;  %1602 = vrcp.f32 %v918_v2  ;;  %v1341_v8 = vmul.f32 -1.442695, %v584_v6  ;;  %v1404_v9 = vpack.c.bf16 %v1581_v4, %v1579_v1 }
 0x1ff   : > { %v1585_v10 = vpop.eup %1584  ;;  %1604 = vpow2.f32 %v1339_v63 }
 0x200   : > { %v1587_v11 = vpop.eup %1586  ;;  %v919_v12 = vadd.f32 1.0, %v1585_v10  ;;  %1606 = vpow2.f32 %v1340_v5  ;;  %1405 = vmatprep.subr.bf16.mxu0 %v1404_v9  ;;  %1465 = vmatprep.subr.bf16.mxu1 %v1404_v9  ;;  %v588_v13 = vpop.f32.mrb[22].mxu1 }
 0x201   : > { %v1589_v14 = vpop.eup %1588  ;;  %v920_v15 = vadd.f32 1.0, %v1587_v11  ;;  %1608 = vpow2.f32 %v1341_v8  ;;  %1407 = vmatpush1.bf16.xpose.msra.mxu0 %v1406_v0  ;;  %1481 = vmatpush1.bf16.xpose.msra.mxu1 %v1406_v0  ;;  %v1342_v16 = vmul.f32 -1.442695, %v588_v13  ;;  %v590_v17 = vpop.f32.mrb[23].mxu1 }
 0x202   : > { %v1591_v18 = vpop.eup %1590  ;;  %1610 = vrcp.f32 %v919_v12  ;;  %v1343_v19 = vmul.f32 -1.442695, %v590_v17 }
 0x203   : > { %v1593_v20 = vpop.eup %1592  ;;  %1612 = vrcp.f32 %v920_v15  ;;  %v1410_v21 = vpack.c.bf16 %v1591_v18, %v1583_v7 }
 0x204   : > { %v1595_v22 = vpop.eup %1594  ;;  %v921_v23 = vadd.f32 1.0, %v1593_v20  ;;  %1614 = vpow2.f32 %v1342_v16  ;;  %v594_v24 = vpop.f32.mrb[24].mxu1 }
 0x205   : > { %v1597_v25 = vpop.eup %1596  ;;  %v922_v26 = vadd.f32 1.0, %v1595_v22  ;;  %1616 = vpow2.f32 %v1343_v19  ;;  %v1344_v27 = vmul.f32 -1.442695, %v594_v24  ;;  %v596_v28 = vpop.f32.mrb[25].mxu1 }
 0x206   : > { %v1599_v29 = vpop.eup %1598  ;;  %1618 = vrcp.f32 %v921_v23  ;;  %v1345_v30 = vmul.f32 -1.442695, %v596_v28  ;;  %v1408_v32 = vpack.c.bf16 %v1597_v25, %v1589_v14 }
 0x207   : > { %v1601_v33 = vpop.eup %1600  ;;  %1620 = vrcp.f32 %v922_v26 }
 0x208   : > { %v1603_v34 = vpop.eup %1602  ;;  %v923_v35 = vadd.f32 1.0, %v1601_v33  ;;  %1622 = vpow2.f32 %v1344_v27  ;;  %1409 = vmatprep.subr.bf16.mxu0 %v1408_v32  ;;  %1466 = vmatprep.subr.bf16.mxu1 %v1408_v32  ;;  %v600_v36 = vpop.f32.mrb[26].mxu1 }
 0x209   : > { %v1605_v37 = vpop.eup %1604  ;;  %1624 = vpow2.f32 %v1345_v30  ;;  %1411 = vmatpush1.bf16.xpose.msra.mxu0 %v1410_v21  ;;  %1482 = vmatpush1.bf16.xpose.msra.mxu1 %v1410_v21  ;;  %v1346_v38 = vmul.f32 -1.442695, %v600_v36  ;;  %v602_v39 = vpop.f32.mrb[27].mxu1 }
 0x20a   : > { %v1607_v40 = vpop.eup %1606  ;;  %1626 = vrcp.f32 %v923_v35  ;;  %v924_v41 = vadd.f32 1.0, %v1605_v37  ;;  %v1347_v45 = vmul.f32 -1.442695, %v602_v39 }
 0x20b   : > { %v1609_v43 = vpop.eup %1608  ;;  %v925_v44 = vadd.f32 1.0, %v1607_v40  ;;  %1628 = vpow2.f32 %v1346_v38 }
 0x20c   : > { %v1611_v46 = vpop.eup %1610  ;;  %1630 = vrcp.f32 %v924_v41  ;;  %v926_v47 = vadd.f32 1.0, %v1609_v43  ;;  %v606_v48 = vpop.f32.mrb[28].mxu1 }
 0x20d   : > { %v1613_v49 = vpop.eup %1612  ;;  %1632 = vrcp.f32 %v925_v44  ;;  %v1348_v50 = vmul.f32 -1.442695, %v606_v48  ;;  %v608_v51 = vpop.f32.mrb[29].mxu1  ;;  %v1414_v52 = vpack.c.bf16 %v1611_v46, %v1599_v29 }
 0x20e   : > { %v1615_v53 = vpop.eup %1614  ;;  %1634 = vrcp.f32 %v926_v47  ;;  %v1412_v54 = vpack.c.bf16 %v1613_v49, %v1603_v34  ;;  %v1349_v57 = vmul.f32 -1.442695, %v608_v51 }
 0x20f   : > { %v1617_v55 = vpop.eup %1616  ;;  %v927_v56 = vadd.f32 1.0, %v1615_v53  ;;  %1636 = vpow2.f32 %v1347_v45 }
 0x210   : > { %v1619_v58 = vpop.eup %1618  ;;  %v928_v59 = vadd.f32 1.0, %v1617_v55  ;;  %1638 = vpow2.f32 %v1348_v50  ;;  %1413 = vmatprep.subr.bf16.mxu0 %v1412_v54  ;;  %1467 = vmatprep.subr.bf16.mxu1 %v1412_v54  ;;  %v612_v60 = vpop.f32.mrb[30].mxu1 }
 0x211   : > { %v1621_v61 = vpop.eup %1620  ;;  %1640 = vrcp.f32 %v927_v56  ;;  %1415 = vmatpush1.bf16.xpose.msra.mxu0 %v1414_v52  ;;  %1483 = vmatpush1.bf16.xpose.msra.mxu1 %v1414_v52  ;;  %v1350_v62 = vmul.f32 -1.442695, %v612_v60  ;;  %v614_v63 = vpop.f32.mrb[31].mxu1 }
 0x212   : > { %v1623_v0 = vpop.eup %1622  ;;  %1642 = vrcp.f32 %v928_v59  ;;  %v1351_v3 = vmul.f32 -1.442695, %v614_v63 }
 0x213   : > { %v1625_v1 = vpop.eup %1624  ;;  %v929_v2 = vadd.f32 1.0, %v1623_v0  ;;  %1644 = vpow2.f32 %v1349_v57 }
 0x214   : > { %v1627_v4 = vpop.eup %1626  ;;  %v930_v5 = vadd.f32 1.0, %v1625_v1  ;;  %1646 = vpow2.f32 %v1350_v62  ;;  %v618_v6 = vpop.f32.mrb[32].mxu1 }
 0x215   : > { %v1629_v7 = vpop.eup %1628  ;;  %1648 = vrcp.f32 %v929_v2  ;;  %v1352_v8 = vmul.f32 -1.442695, %v618_v6  ;;  %v620_v9 = vpop.f32.mrb[33].mxu1  ;;  %v1418_v10 = vpack.c.bf16 %v1627_v4, %v1619_v58 }
 0x216   : > { %v1631_v11 = vpop.eup %1630  ;;  %1650 = vrcp.f32 %v930_v5  ;;  %v931_v12 = vadd.f32 1.0, %v1629_v7  ;;  %v1353_v13 = vmul.f32 -1.442695, %v620_v9 }
 0x217   : > { %v1633_v14 = vpop.eup %1632  ;;  %1652 = vpow2.f32 %v1351_v3  ;;  %v1416_v15 = vpack.c.bf16 %v1631_v11, %v1621_v61 }
 0x218   : > { %v1635_v16 = vpop.eup %1634  ;;  %1654 = vrcp.f32 %v931_v12  ;;  %v624_v17 = vpop.f32.mrb[34].mxu1 }
 0x219   : > { %v1637_v18 = vpop.eup %1636  ;;  %1656 = vpow2.f32 %v1352_v8  ;;  %1417 = vmatprep.subr.bf16.mxu0 %v1416_v15  ;;  %1468 = vmatprep.subr.bf16.mxu1 %v1416_v15  ;;  %v1354_v19 = vmul.f32 -1.442695, %v624_v17  ;;  %v626_v20 = vpop.f32.mrb[35].mxu1 }
 0x21a   : > { %v1639_v21 = vpop.eup %1638  ;;  %v932_v22 = vadd.f32 1.0, %v1637_v18  ;;  %1658 = vpow2.f32 %v1353_v13  ;;  %1419 = vmatpush1.bf16.xpose.msra.mxu0 %v1418_v10  ;;  %1484 = vmatpush1.bf16.xpose.msra.mxu1 %v1418_v10  ;;  %v1355_v23 = vmul.f32 -1.442695, %v626_v20 }
 0x21b   : > { %v1641_v24 = vpop.eup %1640  ;;  %v933_v25 = vadd.f32 1.0, %v1639_v21  ;;  %1660 = vpow2.f32 %v1354_v19 }
 0x21c   : > { %v1643_v26 = vpop.eup %1642  ;;  %1662 = vrcp.f32 %v932_v22  ;;  %v630_v27 = vpop.f32.mrb[36].mxu1  ;;  %v1422_v28 = vpack.c.bf16 %v1641_v24, %v1633_v14 }
 0x21d   : > { %v1645_v29 = vpop.eup %1644  ;;  %1664 = vrcp.f32 %v933_v25  ;;  %v1356_v30 = vmul.f32 -1.442695, %v630_v27  ;;  %v632_v32 = vpop.f32.mrb[37].mxu1  ;;  %v1420_v33 = vpack.c.bf16 %v1643_v26, %v1635_v16 }
 0x21e   : > { %v1647_v34 = vpop.eup %1646  ;;  %v934_v35 = vadd.f32 1.0, %v1645_v29  ;;  %1666 = vpow2.f32 %v1355_v23  ;;  %v1357_v36 = vmul.f32 -1.442695, %v632_v32 }
 0x21f   : > { %v1649_v37 = vpop.eup %1648  ;;  %v935_v38 = vadd.f32 1.0, %v1647_v34  ;;  %1668 = vpow2.f32 %v1356_v30  ;;  %1421 = vmatprep.subr.bf16.mxu0 %v1420_v33  ;;  %1469 = vmatprep.subr.bf16.mxu1 %v1420_v33 }
 0x220   : > { %v1651_v39 = vpop.eup %1650  ;;  %1670 = vrcp.f32 %v934_v35  ;;  %v636_v40 = vpop.f32.mrb[38].mxu1 }
 0x221   : > { %v1653_v41 = vpop.eup %1652  ;;  %1672 = vrcp.f32 %v935_v38  ;;  %v1358_v43 = vmul.f32 -1.442695, %v636_v40  ;;  %v638_v44 = vpop.f32.mrb[39].mxu1 }
 0x222   : > { %v1655_v45 = vpop.eup %1654  ;;  %v936_v46 = vadd.f32 1.0, %v1653_v41  ;;  %1674 = vpow2.f32 %v1357_v36  ;;  %1423 = vmatpush1.bf16.xpose.msra.mxu0 %v1422_v28  ;;  %1485 = vmatpush1.bf16.xpose.msra.mxu1 %v1422_v28  ;;  %v1359_v47 = vmul.f32 -1.442695, %v638_v44 }
 0x223   : > { %v1657_v48 = vpop.eup %1656  ;;  %1676 = vpow2.f32 %v1358_v43  ;;  %v1426_v49 = vpack.c.bf16 %v1655_v45, %v1649_v37 }
 0x224   : > { %v1659_v50 = vpop.eup %1658  ;;  %1678 = vrcp.f32 %v936_v46  ;;  %v937_v51 = vadd.f32 1.0, %v1657_v48  ;;  %v642_v52 = vpop.f32.mrb[40].mxu1 }
 0x225   : > { %v1661_v53 = vpop.eup %1660  ;;  %v938_v54 = vadd.f32 1.0, %v1659_v50  ;;  %1680 = vpow2.f32 %v1359_v47  ;;  %v1360_v55 = vmul.f32 -1.442695, %v642_v52  ;;  %v644_v56 = vpop.f32.mrb[41].mxu1 }
 0x226   : > { %v1663_v57 = vpop.eup %1662  ;;  %1682 = vrcp.f32 %v937_v51  ;;  %v939_v58 = vadd.f32 1.0, %v1661_v53  ;;  %v1361_v59 = vmul.f32 -1.442695, %v644_v56 }
 0x227   : > { %v1665_v60 = vpop.eup %1664  ;;  %1684 = vrcp.f32 %v938_v54  ;;  %v1424_v61 = vpack.c.bf16 %v1663_v57, %v1651_v39 }
 0x228   : > { %v1667_v62 = vpop.eup %1666  ;;  %1686 = vrcp.f32 %v939_v58  ;;  %v648_v63 = vpop.f32.mrb[42].mxu1 }
 0x229   : > { %v1669_v0 = vpop.eup %1668  ;;  %v940_v1 = vadd.f32 1.0, %v1667_v62  ;;  %1688 = vpow2.f32 %v1360_v55  ;;  %1425 = vmatprep.subr.bf16.mxu0 %v1424_v61  ;;  %1470 = vmatprep.subr.bf16.mxu1 %v1424_v61  ;;  %v1362_v2 = vmul.f32 -1.442695, %v648_v63  ;;  %v650_v3 = vpop.f32.mrb[43].mxu1 }
 0x22a   : > { %v1671_v4 = vpop.eup %1670  ;;  %v941_v5 = vadd.f32 1.0, %v1669_v0  ;;  %1690 = vpow2.f32 %v1361_v59  ;;  %1427 = vmatpush1.bf16.xpose.msra.mxu0 %v1426_v49  ;;  %1486 = vmatpush1.bf16.xpose.msra.mxu1 %v1426_v49  ;;  %v1363_v6 = vmul.f32 -1.442695, %v650_v3 }
 0x22b   : > { %v1673_v7 = vpop.eup %1672  ;;  %1692 = vrcp.f32 %v940_v1 }
 0x22c   : > { %v1675_v8 = vpop.eup %1674  ;;  %1694 = vrcp.f32 %v941_v5  ;;  %v654_v9 = vpop.f32.mrb[44].mxu1  ;;  %v1430_v10 = vpack.c.bf16 %v1673_v7, %v1665_v60 }
 0x22d   : > { %v1677_v11 = vpop.eup %1676  ;;  %v942_v12 = vadd.f32 1.0, %v1675_v8  ;;  %1696 = vpow2.f32 %v1362_v2  ;;  %v1364_v13 = vmul.f32 -1.442695, %v654_v9  ;;  %v656_v14 = vpop.f32.mrb[45].mxu1 }
 0x22e   : > { %v1679_v15 = vpop.eup %1678  ;;  %v943_v16 = vadd.f32 1.0, %v1677_v11  ;;  %1698 = vpow2.f32 %v1363_v6  ;;  %v1365_v18 = vmul.f32 -1.442695, %v656_v14 }
 0x22f   : > { %v1681_v17 = vpop.eup %1680  ;;  %1700 = vrcp.f32 %v942_v12  ;;  %v1428_v19 = vpack.c.bf16 %v1679_v15, %v1671_v4 }
 0x230   : > { %v1683_v20 = vpop.eup %1682  ;;  %1702 = vrcp.f32 %v943_v16  ;;  %v944_v21 = vadd.f32 1.0, %v1681_v17  ;;  %v660_v22 = vpop.f32.mrb[46].mxu1 }
 0x231   : > { %v1685_v23 = vpop.eup %1684  ;;  %1704 = vpow2.f32 %v1364_v13  ;;  %1429 = vmatprep.subr.bf16.mxu0 %v1428_v19  ;;  %1471 = vmatprep.subr.bf16.mxu1 %v1428_v19  ;;  %v1366_v24 = vmul.f32 -1.442695, %v660_v22  ;;  %v662_v25 = vpop.f32.mrb[47].mxu1 }
 0x232   : > { %v1687_v26 = vpop.eup %1686  ;;  %1706 = vrcp.f32 %v944_v21  ;;  %1431 = vmatpush1.bf16.xpose.msra.mxu0 %v1430_v10  ;;  %1487 = vmatpush1.bf16.xpose.msra.mxu1 %v1430_v10  ;;  %v1367_v27 = vmul.f32 -1.442695, %v662_v25 }
 0x233   : > { %v1689_v28 = vpop.eup %1688  ;;  %1708 = vpow2.f32 %v1365_v18  ;;  %v1434_v29 = vpack.c.bf16 %v1687_v26, %v1683_v20 }
 0x234   : > { %v1691_v30 = vpop.eup %1690  ;;  %v945_v32 = vadd.f32 1.0, %v1689_v28  ;;  %1710 = vpow2.f32 %v1366_v24  ;;  %v666_v33 = vpop.f32.mrb[48].mxu1 }
 0x235   : > { %v1693_v34 = vpop.eup %1692  ;;  %v946_v35 = vadd.f32 1.0, %v1691_v30  ;;  %1712 = vpow2.f32 %v1367_v27  ;;  %v1368_v36 = vmul.f32 -1.442695, %v666_v33  ;;  %v668_v37 = vpop.f32.mrb[49].mxu1 }
 0x236   : > { %v1695_v38 = vpop.eup %1694  ;;  %1714 = vrcp.f32 %v945_v32  ;;  %v1369_v39 = vmul.f32 -1.442695, %v668_v37  ;;  %v1432_v40 = vpack.c.bf16 %v1693_v34, %v1685_v23 }
 0x237   : > { %v1697_v41 = vpop.eup %1696  ;;  %1716 = vrcp.f32 %v946_v35 }
 0x238   : > { %v1699_v43 = vpop.eup %1698  ;;  %v947_v44 = vadd.f32 1.0, %v1697_v41  ;;  %1718 = vpow2.f32 %v1368_v36  ;;  %1433 = vmatprep.subr.bf16.mxu0 %v1432_v40  ;;  %1472 = vmatprep.subr.bf16.mxu1 %v1432_v40  ;;  %v672_v45 = vpop.f32.mrb[50].mxu1 }
 0x239   : > { %v1701_v46 = vpop.eup %1700  ;;  %v948_v47 = vadd.f32 1.0, %v1699_v43  ;;  %1720 = vpow2.f32 %v1369_v39  ;;  %v1370_v48 = vmul.f32 -1.442695, %v672_v45  ;;  %v674_v49 = vpop.f32.mrb[51].mxu1 }
 0x23a   : > { %v1703_v50 = vpop.eup %1702  ;;  %1722 = vrcp.f32 %v947_v44  ;;  %1435 = vmatpush1.bf16.xpose.msra.mxu0 %v1434_v29  ;;  %1488 = vmatpush1.bf16.xpose.msra.mxu1 %v1434_v29  ;;  %v1371_v51 = vmul.f32 -1.442695, %v674_v49 }
 0x23b   : > { %v1705_v52 = vpop.eup %1704  ;;  %1724 = vrcp.f32 %v948_v47  ;;  %v1438_v53 = vpack.c.bf16 %v1703_v50, %v1695_v38 }
 0x23c   : > { %v1707_v54 = vpop.eup %1706  ;;  %v949_v55 = vadd.f32 1.0, %v1705_v52  ;;  %1726 = vpow2.f32 %v1370_v48  ;;  %v678_v56 = vpop.f32.mrb[52].mxu1 }
 0x23d   : > { %v1709_v57 = vpop.eup %1708  ;;  %1728 = vpow2.f32 %v1371_v51  ;;  %v1372_v58 = vmul.f32 -1.442695, %v678_v56  ;;  %v680_v59 = vpop.f32.mrb[53].mxu1  ;;  %v1436_v60 = vpack.c.bf16 %v1707_v54, %v1701_v46 }
 0x23e   : > { %v1711_v61 = vpop.eup %1710  ;;  %1730 = vrcp.f32 %v949_v55  ;;  %v950_v62 = vadd.f32 1.0, %v1709_v57  ;;  %v1373_v1 = vmul.f32 -1.442695, %v680_v59 }
 0x23f   : > { %v1713_v63 = vpop.eup %1712  ;;  %v951_v0 = vadd.f32 1.0, %v1711_v61  ;;  %1732 = vpow2.f32 %v1372_v58  ;;  %1437 = vmatprep.subr.bf16.mxu0 %v1436_v60  ;;  %1473 = vmatprep.subr.bf16.mxu1 %v1436_v60 }
 0x240   : > { %v1715_v2 = vpop.eup %1714  ;;  %1734 = vrcp.f32 %v950_v62  ;;  %v952_v3 = vadd.f32 1.0, %v1713_v63  ;;  %v684_v4 = vpop.f32.mrb[54].mxu1 }
 0x241   : > { %v1717_v5 = vpop.eup %1716  ;;  %1736 = vrcp.f32 %v951_v0  ;;  %v1374_v6 = vmul.f32 -1.442695, %v684_v4  ;;  %v686_v7 = vpop.f32.mrb[55].mxu1 }
 0x242   : > { %v1719_v8 = vpop.eup %1718  ;;  %1738 = vrcp.f32 %v952_v3  ;;  %1439 = vmatpush1.bf16.xpose.msra.mxu0 %v1438_v53  ;;  %1489 = vmatpush1.bf16.xpose.msra.mxu1 %v1438_v53  ;;  %v1375_v11 = vmul.f32 -1.442695, %v686_v7 }
 0x243   : > { %v1721_v9 = vpop.eup %1720  ;;  %v953_v10 = vadd.f32 1.0, %v1719_v8  ;;  %1740 = vpow2.f32 %v1373_v1 }
 0x244   : > { %v1723_v12 = vpop.eup %1722  ;;  %v954_v13 = vadd.f32 1.0, %v1721_v9  ;;  %1742 = vpow2.f32 %v1374_v6  ;;  %v690_v14 = vpop.f32.mrb[56].mxu1 }
 0x245   : > { %v1725_v15 = vpop.eup %1724  ;;  %1744 = vrcp.f32 %v953_v10  ;;  %v1376_v16 = vmul.f32 -1.442695, %v690_v14  ;;  %v692_v17 = vpop.f32.mrb[57].mxu1  ;;  %v1442_v18 = vpack.c.bf16 %v1723_v12, %v1715_v2 }
 0x246   : > { %v1727_v19 = vpop.eup %1726  ;;  %1746 = vrcp.f32 %v954_v13  ;;  %v1440_v20 = vpack.c.bf16 %v1725_v15, %v1717_v5  ;;  %v1377_v23 = vmul.f32 -1.442695, %v692_v17 }
 0x247   : > { %v1729_v21 = vpop.eup %1728  ;;  %v955_v22 = vadd.f32 1.0, %v1727_v19  ;;  %1748 = vpow2.f32 %v1375_v11 }
 0x248   : > { %v1731_v24 = vpop.eup %1730  ;;  %v956_v25 = vadd.f32 1.0, %v1729_v21  ;;  %1750 = vpow2.f32 %v1376_v16  ;;  %1441 = vmatprep.subr.bf16.mxu0 %v1440_v20  ;;  %1474 = vmatprep.subr.bf16.mxu1 %v1440_v20  ;;  %v696_v26 = vpop.f32.mrb[58].mxu1 }
 0x249   : > { %v1733_v27 = vpop.eup %1732  ;;  %1752 = vrcp.f32 %v955_v22  ;;  %v1378_v28 = vmul.f32 -1.442695, %v696_v26  ;;  %v698_v29 = vpop.f32.mrb[59].mxu1 }
 0x24a   : > { %v1735_v30 = vpop.eup %1734  ;;  %1754 = vrcp.f32 %v956_v25  ;;  %v957_v32 = vadd.f32 1.0, %v1733_v27  ;;  %1443 = vmatpush1.bf16.xpose.msra.mxu0 %v1442_v18  ;;  %1490 = vmatpush1.bf16.xpose.msra.mxu1 %v1442_v18  ;;  %v1379_v33 = vmul.f32 -1.442695, %v698_v29  ;;  %v1174_v29 = vstv %s217_s24 }
 0x24b   : > { %v1737_v34 = vpop.eup %1736  ;;  %1756 = vpow2.f32 %v1377_v23 }
 0x24c   : > { %v1739_v35 = vpop.eup %1738  ;;  %1758 = vrcp.f32 %v957_v32  ;;  %v702_v36 = vpop.f32.mrb[60].mxu1  ;;  %v1446_v37 = vpack.c.bf16 %v1737_v34, %v1731_v24 }
 0x24d   : > { %v1741_v38 = vpop.eup %1740  ;;  %1760 = vpow2.f32 %v1378_v28  ;;  %v1380_v39 = vmul.f32 -1.442695, %v702_v36  ;;  %v704_v40 = vpop.f32.mrb[61].mxu1  ;;  %v1444_v41 = vpack.c.bf16 %v1739_v35, %v1735_v30 }
 0x24e   : > { %v1743_v43 = vpop.eup %1742  ;;  %v958_v44 = vadd.f32 1.0, %v1741_v38  ;;  %1762 = vpow2.f32 %v1379_v33  ;;  %v1381_v45 = vmul.f32 -1.442695, %v704_v40 }
 0x24f   : > { %v1745_v46 = vpop.eup %1744  ;;  %v959_v47 = vadd.f32 1.0, %v1743_v43  ;;  %1764 = vpow2.f32 %v1380_v39  ;;  %1445 = vmatprep.subr.bf16.mxu0 %v1444_v41  ;;  %1475 = vmatprep.subr.bf16.mxu1 %v1444_v41  ;;  %v1795_v39 = vld [vmem:[%s1949_s6 + $0x10] sm:$0xff]  ;;  %v1796_v41 = vld [vmem:[%s1949_s6 + $0x8] sm:$0xff] }
 0x250   : > { %v1747_v48 = vpop.eup %1746  ;;  %1766 = vrcp.f32 %v958_v44  ;;  %v708_v49 = vpop.f32.mrb[62].mxu1  ;;  %v1797_v44 = vld [vmem:[%s1949_s6 + $0x18] sm:$0xff] }
 0x251   : > { %v1749_v50 = vpop.eup %1748  ;;  %1768 = vrcp.f32 %v959_v47  ;;  %v1382_v51 = vmul.f32 -1.442695, %v708_v49  ;;  %v710_v52 = vpop.f32.mrb[63].mxu1 }
 0x252   : > { %v1751_v53 = vpop.eup %1750  ;;  %v960_v54 = vadd.f32 1.0, %v1749_v50  ;;  %1770 = vpow2.f32 %v1381_v45  ;;  %1447 = vmatpush1.bf16.xpose.msra.mxu0 %v1446_v37  ;;  %1491 = vmatpush1.bf16.xpose.msra.mxu1 %v1446_v37  ;;  %v1383_v55 = vmul.f32 -1.442695, %v710_v52 }
 0x253   : > { %v1753_v56 = vpop.eup %1752  ;;  %1772 = vpow2.f32 %v1382_v51  ;;  %v961_v58 = vadd.f32 1.0, %v1751_v53 }
 0x254   : > { %v1755_v57 = vpop.eup %1754  ;;  %1774 = vrcp.f32 %v960_v54  ;;  %v1450_v59 = vpack.c.bf16 %v1753_v56, %v1745_v46 }
 0x255   : > { %v1757_v60 = vpop.eup %1756  ;;  %v1448_v61 = vpack.c.bf16 %v1755_v57, %v1747_v48  ;;  %1776 = vpow2.f32 %v1383_v55 }
 0x256   : > { %v1759_v62 = vpop.eup %1758  ;;  %v962_v63 = vadd.f32 1.0, %v1757_v60  ;;  %1778 = vrcp.f32 %v961_v58 }
 0x257   : > { %v1761_v0 = vpop.eup %1760  ;;  %1449 = vmatprep.subr.bf16.mxu0 %v1448_v61  ;;  %1476 = vmatprep.subr.bf16.mxu1 %v1448_v61 }
 0x258   : > { %v1763_v1 = vpop.eup %1762  ;;  %v963_v2 = vadd.f32 1.0, %v1761_v0  ;;  %1780 = vrcp.f32 %v962_v63 }
 0x259   : > { %v1765_v3 = vpop.eup %1764  ;;  %v964_v4 = vadd.f32 1.0, %v1763_v1 }
 0x25a   : > { %v1767_v5 = vpop.eup %1766  ;;  %1782 = vrcp.f32 %v963_v2  ;;  %1451 = vmatpush1.bf16.xpose.msra.mxu0 %v1450_v59  ;;  %1492 = vmatpush1.bf16.xpose.msra.mxu1 %v1450_v59  ;;  %v965_v7 = vadd.f32 1.0, %v1765_v3 }
 0x25b   : > { %v1769_v6 = vpop.eup %1768  ;;  %1784 = vrcp.f32 %v964_v4 }
 0x25c   : > { %v1771_v8 = vpop.eup %1770  ;;  %v1454_v9 = vpack.c.bf16 %v1769_v6, %v1759_v62  ;;  %1786 = vrcp.f32 %v965_v7 }
 0x25d   : > { %v1773_v10 = vpop.eup %1772  ;;  %v966_v12 = vadd.f32 1.0, %v1771_v8 }
 0x25e   : > { %v1775_v11 = vpop.eup %1774  ;;  %v967_v13 = vadd.f32 1.0, %v1773_v10 }
 0x25f   : > { %v1452_v14 = vpack.c.bf16 %v1775_v11, %v1767_v5  ;;  %v1777_v15 = vpop.eup %1776 }
 0x260   : > { %1788 = vrcp.f32 %v967_v13  ;;  %v968_v16 = vadd.f32 1.0, %v1777_v15  ;;  %v1779_v17 = vpop.eup %1778 }
 0x261   : > { %1453 = vmatprep.subr.bf16.mxu0 %v1452_v14  ;;  %1477 = vmatprep.subr.bf16.mxu1 %v1452_v14  ;;  %1790 = vrcp.f32 %v966_v12 }
 0x262   : > { %1455 = vmatpush1.bf16.xpose.msra.mxu0 %v1454_v9  ;;  %1493 = vmatpush1.bf16.xpose.msra.mxu1 %v1454_v9  ;;  %v1781_v18 = vpop.eup %1780  ;;  %1792 = vrcp.f32 %v968_v16 }
 0x264   : > { %v1783_v19 = vpop.eup %1782 }
 0x265   : > { %v1785_v20 = vpop.eup %1784  ;;  %v1458_v21 = vpack.c.bf16 %v1783_v19, %v1779_v17 }
 0x266   : > { %v1456_v22 = vpack.c.bf16 %v1785_v20, %v1781_v18  ;;  %v1787_v23 = vpop.eup %1786 }
 0x268   : > { %1457 = vmatprep.subr.bf16.mxu0 %v1456_v22  ;;  %1478 = vmatprep.subr.bf16.mxu1 %v1456_v22 }
 0x26a   : > { %v1789_v24 = vpop.eup %1788  ;;  %1459 = vmatpush1.bf16.xpose.msra.mxu0 %v1458_v21  ;;  %1494 = vmatpush1.bf16.xpose.msra.mxu1 %v1458_v21 }
 0x26b   : > { %v1462_v25 = vpack.c.bf16 %v1789_v24, %v1787_v23  ;;  %v1791_v26 = vpop.eup %1790 }
 0x26c   : > { %v1793_v27 = vpop.eup %1792 }
 0x26d   : > { %v1460_v28 = vpack.c.bf16 %v1793_v27, %v1791_v26 }
 0x26f   : > { %1461 = vmatprep.subr.bf16.mxu0 %v1460_v28  ;;  %1479 = vmatprep.subr.bf16.mxu1 %v1460_v28 }
 0x272   : > { %1463 = vmatpush1.bf16.xpose.msra.mxu0 %v1462_v25  ;;  %1495 = vmatpush1.bf16.xpose.msra.mxu1 %v1462_v25 }
 0x279   : > { %1162 = vmatmul.mubr.f32.vlgmr.msra.gmra.mrb[8].mxu0 %v2074_v31  ;;  %1168 = vmatmul.mubr.f32.vlgmr.msra.gmra.mrb[64].mxu1 %v2076_v42  ;;  %v1794_v42 = vld [vmem:[%s1949_s6] sm:$0xff] }
 0x34c   : > { %v1163_v30 = vpop.f32.mrb[8].mxu0  ;;  %v1169_v32 = vpop.f32.mrb[64].mxu1 }
 0x34d   : > { %v1175_v33 = vmul.f32 %v1174_v29, %v1163_v30  ;;  %v1177_v34 = vmul.f32 %v1174_v29, %v1169_v32  ;;  %v1165_v35 = vpop.f32.mrb[9].mxu0  ;;  %v1171_v36 = vpop.f32.mrb[65].mxu1 }
 0x34e   : > { %v1176_v31 = vmul.f32 %v1174_v29, %v1165_v35  ;;  %v1178_v37 = vmul.f32 %v1174_v29, %v1171_v36 }
 0x34f   : > { %v1179_v38 = vadd.f32 %v1794_v42, %v1175_v33  ;;  %v1181_v40 = vadd.f32 %v1795_v39, %v1177_v34 }
 0x350   : > { %v1180_v43 = vadd.f32 %v1796_v41, %v1176_v31  ;;  %v1182_v45 = vadd.f32 %v1797_v44, %v1178_v37 }
 0x351   : > { %1183 = vst [vmem:[%s206_s30] sm:$0xff] %v1179_v38  ;;  %1185 = vst [vmem:[%s206_s30 + $0x10] sm:$0xff] %v1181_v40 }
 0x352   : > { %1184 = vst [vmem:[%s206_s30 + $0x8] sm:$0xff] %v1180_v43  ;;  %1186 = vst [vmem:[%s206_s30 + $0x18] sm:$0xff] %v1182_v45 }
 0x353   : > { %1811 = shalt.err (!%p1808_p3)
}
 0x354   : > { %s1812_s6 = scalar_lea.hbm %s2089_s10, 512  ;;  %s1816_s21 = scalar_lea.hbm %s2138_s4, 1024 }
 0x355   : > { %p1813_p4 = scmp.ne.s32.totalorder %s2089_s10, %s1812_s6  ;;  %p1817_p9 = scmp.lt.u32.totalorder %s2089_s10, %s2138_s4 }
 0x356   : > { %p1818_p10 = scmp.lt.u32.totalorder %s1816_s21, %s1812_s6  ;;  %p1820_p12 = scmp.lt.u32.totalorder %s1812_s6, %s2089_s10 }
 0x357   : > { %p1814_p7 = pnand %p1813_p4, %p1932_p5 }
 0x358   : > { %p1819_p11 = por %p1818_p10, %p1817_p9 }
 0x359   : > { %p1815_p8 = pneg %p1814_p7 }
 0x35a   : > { %p1821_p13 = por %p1820_p12, %p1819_p11 }
 0x35c   : > { %p1822_p0 = pnand %p1821_p13, %p1815_p8 }
 0x35e   : > { %1825 = shalt.err (!%p1822_p0)
}
 0x35f   : > { %s1864_s28 = smov 256   ;;  %s1865_s29 = smov 16  }
 0x360   : > { %1496 = dma.vmem_to_hbm [thread:$0]  (%p1932_p5), %s2083_s5, 512, %s2089_s10, %s2093_s0, %s1864_s28, %s1864_s28, %s1865_s29  }
 0x361 PF: > { %p1502_p1 = scmp.ge.s32.totalorder %s1860_s20, 2  ;;  %s1216_s30 = sand.u32 1, %s1848_s17  }
 0x362   : > { %s1217_s7 = scalar_lea.sflag [#allocation4], %s1216_s30 }
 0x363   : > { %p1499_p2 = pnand %p1502_p1, %p1936_p6 }
 0x365   : > { %1843 = dma.done.wait (!%p1499_p2), %s1217_s7, 512  }
 0x366   : > { %1845 = vsyncadd (!%p1499_p2), %s1217_s7, 4294966784  ;;  %p15_p3 = scmp.ge.s32.totalorder %s1919_s22, 4   ;;  %s2141_s17 = smov %s1852_s18 }
 0x367   : > { %s2142_s18 = smov %s1856_s19  ;;  %s2143_s19 = smov %s1930_s25 }
 0x368   : > { %s2144_s20 = smov %s1919_s22  ;;  %17 = sbr.rel (!%p15_p3) target bundleno = 5 (0x5), region = 74 }
 0x36f   :  { %1222 = vsyncpa [#allocation4], 1 }
 0x370   :  { %1224 = vsyncpa [#allocation4 + $0x1], 1 }

</bundles_post_ra>
